<compile_context>
chip_gen: v7x
topology: tpu7x:2x2x1
jax: 0.10.0
libtpu: 0.0.40
codegen_flags: <defaults>
</compile_context>

<pallas_src>
import jax
import jax.numpy as jnp
from jax.experimental import pallas as pl
from jax.experimental.pallas import tpu as pltpu


def _round_up(n, m):
    return (n + m - 1) // m * m


_PC = 16                                  # channel padding (full bf16 sublane fill)
_WP1 = 66                                 # 64 + 2 (SAME padding), block 1
_WP2 = 34                                 # 32 + 2, block 2
_S1 = _round_up(_WP1 * _WP1, 128)         # 4480 = 35 * 128 (lane-dense)
_S2 = _round_up(_WP2 * _WP2, 128)         # 1280 = 10 * 128


# --------------------------- pltpu.roll sign probe ---------------------------
# pltpu.roll is expected to follow jnp.roll's convention; probe it once,
# eagerly, on the same default backend as the main kernel, so a convention
# difference across jax versions cannot silently flip the convolution taps.

_ROLL_MATCHES_JNP = None


def _roll_matches_jnp():
    global _ROLL_MATCHES_JNP
    if _ROLL_MATCHES_JNP is None:
        def probe(x_ref, o_ref):
            o_ref[...] = pltpu.roll(x_ref[...], 1, axis=1)

        with jax.ensure_compile_time_eval():
            x = jnp.arange(8 * 128, dtype=jnp.float32).reshape(8, 128)
            y = pl.pallas_call(
                probe, out_shape=jax.ShapeDtypeStruct((8, 128), jnp.float32))(x)
            y00 = float(y[0, 0])
        if y00 == 127.0:
            _ROLL_MATCHES_JNP = True          # jnp.roll convention
        elif y00 == 1.0:
            _ROLL_MATCHES_JNP = False         # opposite convention
        else:
            raise RuntimeError(f"unexpected pltpu.roll behaviour: {y00}")
    return _ROLL_MATCHES_JNP


# ------------------------------ in-kernel helpers -----------------------------

def _shift(x, s, n):
    """y[:, q] = x[:, (q + s) % n] for a static shift s (lane-axis XLU roll)."""
    s = s % n
    if s == 0:
        return x
    amt = (n - s) if _roll_matches_jnp() else s
    return pltpu.roll(x, amt, axis=1)


def _stack_taps(a, wp, n, stk_ref):
    """Write the 9 shifted copies of `a` ([_PC, n] bf16) into stk_ref
    ([9*_PC, n] bf16) so one K=144 MXU matmul computes the whole 3x3 conv."""
    for ky in range(3):
        for kx in range(3):
            t = ky * 3 + kx
            stk_ref[t * _PC:(t + 1) * _PC, :] = _shift(a, (ky - 1) * wp + (kx - 1), n)


def _maxpool_map(a, wp, n):
    """Max over the 2x2 window anchored at every flattened position; the
    pooled values live at the odd-(row, col) anchors of the padded layout."""
    return jnp.maximum(
        jnp.maximum(a, _shift(a, 1, n)),
        jnp.maximum(_shift(a, wp, n), _shift(a, wp + 1, n)))


# ----------------------------------- kernel -----------------------------------

def _tinyvgg_kernel(x_ref, w1_ref, b1_ref, w2_ref, b2_ref, w3_ref, b3_ref,
                    w4_ref, b4_ref, mask1_ref, mask2_ref, sel_ref, vfc_ref,
                    bfc_ref, onehot_ref, out_ref,
                    stk1_ref, stk2_ref, m1_ref, x2_ref, m2_ref, feat_ref):
    f32 = jnp.float32
    bf16 = jnp.bfloat16

    # ------------------- conv_block_1 (66x66 padded layout) -------------------
    x = x_ref[0]                                                    # [16, S1] bf16
    _stack_taps(x, _WP1, _S1, stk1_ref)
    a = jnp.dot(w1_ref[...], stk1_ref[...], preferred_element_type=f32) + b1_ref[...]
    a = jnp.maximum(a, 0.0) * mask1_ref[...]        # ReLU + re-zero pad ring/slack
    _stack_taps(a.astype(bf16), _WP1, _S1, stk1_ref)
    a = jnp.dot(w2_ref[...], stk1_ref[...], preferred_element_type=f32) + b2_ref[...]
    a = jnp.maximum(a, 0.0)
    m1_ref[...] = _maxpool_map(a, _WP1, _S1)

    # ---- in-kernel pool-anchor downsample 66x66-padded -> 34x34-padded x2 ----
    x2_ref[...] = jnp.zeros_like(x2_ref)            # fresh zero ring / slack
    sel = sel_ref[...]                              # [64, 32] bf16, sel[2j, j] = 1
    for i in range(32):
        row = m1_ref[:, pl.ds((1 + 2 * i) * _WP1 + 1, 64)].astype(bf16)  # [16, 64]
        x2_ref[:, pl.ds((1 + i) * _WP2 + 1, 32)] = jnp.dot(
            row, sel, preferred_element_type=f32)

    # ------------------- conv_block_2 (34x34 padded layout) -------------------
    x2 = x2_ref[...].astype(bf16)
    _stack_taps(x2, _WP2, _S2, stk2_ref)
    a = jnp.dot(w3_ref[...], stk2_ref[...], preferred_element_type=f32) + b3_ref[...]
    a = jnp.maximum(a, 0.0) * mask2_ref[...]
    _stack_taps(a.astype(bf16), _WP2, _S2, stk2_ref)
    a = jnp.dot(w4_ref[...], stk2_ref[...], preferred_element_type=f32) + b4_ref[...]
    a = jnp.maximum(a, 0.0)
    m2_ref[...] = _maxpool_map(a, _WP2, _S2)

    # ---- pool-anchor downsample to the compact [16, 256] feature scratch ----
    sel16 = sel[0:32, 0:16]
    for i in range(16):
        row = m2_ref[:, pl.ds((1 + 2 * i) * _WP2 + 1, 32)].astype(bf16)  # [16, 32]
        feat_ref[:, i * 16:(i + 1) * 16] = jnp.dot(
            row, sel16, preferred_element_type=f32)

    # ------------------------------- classifier -------------------------------
    # nn.Flatten()'s NCHW ordering and the channel padding are folded into vfc
    # (host side); n_out = 4 so a VPU multiply + full reduce per logit is cheap.
    feat = feat_ref[...]                                            # [16, 256] f32
    out_row = bfc_ref[...]                                          # [1, 128] f32
    for k in range(vfc_ref.shape[0]):
        t = feat * vfc_ref[k]                                       # [16, 256]
        s = jnp.sum(jnp.sum(t, axis=1, keepdims=True), axis=0, keepdims=True)  # [1,1]
        out_row = out_row + s * onehot_ref[k:k + 1, :]
    out_ref[0] = out_row                                            # lane-dense store


# ---------------------------- host-side preparation ---------------------------

def prepare_params(p):
    """One-time (outside jit) re-layout of PyTorch-style parameters into
    kernel-friendly operands: stacked-K bf16 conv weights, column biases,
    interior masks, the 0/1 column-selection matrix, and the FC weight with
    channel padding + NCHW-flatten folded in."""
    _roll_matches_jnp()                    # resolve the roll convention eagerly
    f32 = jnp.float32
    hid = p["b1"].shape[0]
    n_out = p["bfc"].shape[0]

    def stack_w(w):                        # [Cout, Cin, 3, 3] -> [16, 144] bf16
        cout, cin = w.shape[0], w.shape[1]
        taps = jnp.transpose(w, (2, 3, 0, 1)).reshape(9, cout, cin)
        taps = jnp.pad(taps, ((0, 0), (0, _PC - cout), (0, _PC - cin)))
        return jnp.transpose(taps, (1, 0, 2)).reshape(_PC, 9 * _PC).astype(jnp.bfloat16)

    def bias_col(b):
        return jnp.pad(b, (0, _PC - b.shape[0])).reshape(_PC, 1).astype(f32)

    def interior_mask(h, s_img):
        wp = h + 2
        m = jnp.zeros((wp, wp), f32).at[1:h + 1, 1:h + 1].set(1.0).reshape(-1)
        return jnp.pad(m, (0, s_img - wp * wp)).reshape(1, s_img)

    sel = (jnp.arange(64)[:, None] == 2 * jnp.arange(32)[None, :]).astype(jnp.bfloat16)

    wfc_r = p["wfc"].reshape(n_out, hid, 16 * 16).astype(f32)       # (c, h, w) flatten
    vfc = jnp.zeros((n_out, _PC, 256), f32).at[:, :hid, :].set(wfc_r)
    bfc_row = jnp.zeros((1, 128), f32).at[0, :n_out].set(p["bfc"].astype(f32))
    onehot = jnp.eye(n_out, 128, dtype=f32)

    return {
        "w1": stack_w(p["w1"]), "b1": bias_col(p["b1"]),
        "w2": stack_w(p["w2"]), "b2": bias_col(p["b2"]),
        "w3": stack_w(p["w3"]), "b3": bias_col(p["b3"]),
        "w4": stack_w(p["w4"]), "b4": bias_col(p["b4"]),
        "mask1": interior_mask(64, _S1), "mask2": interior_mask(32, _S2),
        "sel": sel, "vfc": vfc, "bfc_row": bfc_row, "onehot": onehot,
    }


# -------------------------------- forward pass --------------------------------

def tinyvgg_forward(x_nchw, pp):
    B, c_in = x_nchw.shape[0], x_nchw.shape[1]
    assert x_nchw.shape[2] == 64 and x_nchw.shape[3] == 64
    n_out = pp["vfc"].shape[0]

    # NCHW -> channel-padded, spatially padded, lane-padded [B, 16, S1] bf16.
    # (Thin XLA layout prep; everything else runs inside one pallas_call.)
    x = jnp.pad(x_nchw, ((0, 0), (0, _PC - c_in), (1, 1), (1, 1)))
    x = x.reshape(B, _PC, _WP1 * _WP1)
    x = jnp.pad(x, ((0, 0), (0, 0), (0, _S1 - _WP1 * _WP1))).astype(jnp.bfloat16)

    def full(arr):
        ndim = arr.ndim
        return pl.BlockSpec(tuple(arr.shape), lambda b, _n=ndim: (0,) * _n)

    cp_cls = getattr(pltpu, "CompilerParams", None) or getattr(
        pltpu, "TPUCompilerParams", None)
    cparams = cp_cls(dimension_semantics=("parallel",)) if cp_cls else None

    out = pl.pallas_call(
        _tinyvgg_kernel,
        out_shape=jax.ShapeDtypeStruct((B, 1, 128), jnp.float32),
        grid=(B,),
        in_specs=[
            pl.BlockSpec((1, _PC, _S1), lambda b: (b, 0, 0)),
            full(pp["w1"]), full(pp["b1"]), full(pp["w2"]), full(pp["b2"]),
            full(pp["w3"]), full(pp["b3"]), full(pp["w4"]), full(pp["b4"]),
            full(pp["mask1"]), full(pp["mask2"]), full(pp["sel"]),
            full(pp["vfc"]), full(pp["bfc_row"]), full(pp["onehot"]),
        ],
        out_specs=pl.BlockSpec((1, 1, 128), lambda b: (b, 0, 0)),
        scratch_shapes=[
            pltpu.VMEM((9 * _PC, _S1), jnp.bfloat16),    # stacked taps, block 1
            pltpu.VMEM((9 * _PC, _S2), jnp.bfloat16),    # stacked taps, block 2
            pltpu.VMEM((_PC, _S1), jnp.float32),         # block-1 max-map
            pltpu.VMEM((_PC, _S2), jnp.float32),         # block-2 input
            pltpu.VMEM((_PC, _S2), jnp.float32),         # block-2 max-map
            pltpu.VMEM((_PC, 256), jnp.float32),         # flattened features
        ],
        compiler_params=cparams,
    )(x, pp["w1"], pp["b1"], pp["w2"], pp["b2"], pp["w3"], pp["b3"],
      pp["w4"], pp["b4"], pp["mask1"], pp["mask2"], pp["sel"],
      pp["vfc"], pp["bfc_row"], pp["onehot"])
    return out[:, 0, :n_out]


# --------------------------- pure-JAX reference check -------------------------

def _ref_forward(x_nchw, p):
    def conv(x, w, b):
        y = jax.lax.conv_general_dilated(
            x, w, window_strides=(1, 1), padding="SAME",
            dimension_numbers=("NCHW", "OIHW", "NCHW"))
        return jnp.maximum(y + b[None, :, None, None], 0.0)

    def pool(x):
        B, C, H, W = x.shape
        return x.reshape(B, C, H // 2, 2, W // 2, 2).max(axis=(3, 5))

    y = pool(conv(conv(x_nchw, p["w1"], p["b1"]), p["w2"], p["b2"]))
    y = pool(conv(conv(y, p["w3"], p["b3"]), p["w4"], p["b4"]))
    flat = y.reshape(y.shape[0], -1)
    return flat @ p["wfc"].T + p["bfc"][None, :]


# ------------------------------------ main ------------------------------------

if __name__ == "__main__":
    # TinyVGG(input_shape=3, hidden_units=8, output_shape=4); the classifier's
    # hidden_units*16*16 features imply a 64x64 input (two 2x2 max-pools).
    B, C_IN, HID, OUT, HW = 2, 3, 8, 4, 64

    key = jax.random.PRNGKey(0)
    keys = jax.random.split(key, 11)
    scale = 0.05

    params = {
        "w1": scale * jax.random.normal(keys[0], (HID, C_IN, 3, 3), jnp.float32),
        "b1": scale * jax.random.normal(keys[1], (HID,), jnp.float32),
        "w2": scale * jax.random.normal(keys[2], (HID, HID, 3, 3), jnp.float32),
        "b2": scale * jax.random.normal(keys[3], (HID,), jnp.float32),
        "w3": scale * jax.random.normal(keys[4], (HID, HID, 3, 3), jnp.float32),
        "b3": scale * jax.random.normal(keys[5], (HID,), jnp.float32),
        "w4": scale * jax.random.normal(keys[6], (HID, HID, 3, 3), jnp.float32),
        "b4": scale * jax.random.normal(keys[7], (HID,), jnp.float32),
        "wfc": scale * jax.random.normal(keys[8], (OUT, HID * 16 * 16), jnp.float32),
        "bfc": scale * jax.random.normal(keys[9], (OUT,), jnp.float32),
    }
    x = jax.random.normal(keys[10], (B, C_IN, HW, HW), jnp.float32)

    pp = prepare_params(params)          # outside jit; also resolves roll probe

    fwd = jax.jit(tinyvgg_forward)
    out = jax.block_until_ready(fwd(x, pp))
    assert out.shape == (B, OUT), out.shape

    ref = jax.block_until_ready(_ref_forward(x, params))
    assert jnp.allclose(out, ref, rtol=2e-2, atol=2e-2), (
        float(jnp.max(jnp.abs(out - ref))))

    print("KERNEL_OK")
</pallas_src>

<mosaic_0001>
module attributes {stable_mosaic.version = 11 : i64} {
  func.func @probe(%arg0: memref<8x128xf32, #tpu.memory_space<vmem>>, %arg1: memref<8x128xf32, #tpu.memory_space<vmem>>) attributes {dimension_semantics = [], scalar_prefetch = 0 : i64, scratch_operands = 0 : i64, tpu.core_type = #tpu.core_type<tc>} {
    %c0 = arith.constant 0 : index
    %c0_0 = arith.constant 0 : index
    %0 = vector.load %arg0[%c0, %c0_0] : memref<8x128xf32, #tpu.memory_space<vmem>>, vector<8x128xf32>
    %c1_i32 = arith.constant 1 : i32
    %1 = tpu.dynamic_rotate %0 by %c1_i32 dim 1 : vector<8x128xf32>, i32 -> vector<8x128xf32>
    %c0_1 = arith.constant 0 : index
    %c0_2 = arith.constant 0 : index
    %2 = vector.load %arg1[%c0_1, %c0_2] : memref<8x128xf32, #tpu.memory_space<vmem>>, vector<8x128xf32>
    tpu.vector_store %arg1[%c0_1, %c0_2], %1 {strides = array<i32>} : memref<8x128xf32, #tpu.memory_space<vmem>>, vector<8x128xf32>,
    return
  }
}

</mosaic_0001>

<bundles_post_ra>
// kernel: tpu_custom_call.1
= control target key start
LH: loop header
LB: loop body
LE: loop exit
PB: predicated region body
PF: predicated region fallthrough
CT: control target
= control target key end

     0   :  { %6 = vsyncpa [#allocation3], 0  ;;  %s128_s0 = inlined_call_operand.hbm [shape: f32[8,128], index: 0, kind: input, shape index: {}]   ;;  %s129_s1 = inlined_call_operand.hbm [shape: f32[8,128], index: 1, kind: output, shape index: {}]  }
   0x1   :  { %7 = vsyncpa [#allocation4], 0  ;;  %s91_s6 = smov [#allocation2]   ;;  %s43_s10 = scalar_lea.hbm %s128_s0, 128 }
   0x2   :  { %s14_s7 = sshll.u32 %s91_s6, 4  ;;  %p44_p0 = scmp.ne.s32.totalorder %s128_s0, %s43_s10  ;;  %s15_s7 = int_to_ptr.vmem [resolvable:$true] %s14_s7 }
   0x3   :  { %p47_p1 = scmp.lt.u32.totalorder %s43_s10, %s128_s0 }
   0x5   :  { %p49_p2 = pnand %p47_p1, %p44_p0 }
   0x7   :  { %52 = shalt.err (!%p49_p2)
}
   0x8   :  { %s53_s15 = scalar_lea.vmem %s15_s7, 128  ;;  %p58_p4 = scmp.lt.s32.totalorder %s15_s7, %s15_s7 }
   0x9   :  { %p54_p3 = scmp.ne.s32.totalorder %s15_s7, %s53_s15  ;;  %p59_p5 = scmp.lt.s32.totalorder %s53_s15, %s53_s15 }
   0xb   :  { %p60_p6 = por %p59_p5, %p58_p4 }
   0xd   :  { %p61_p7 = pnand %p60_p6, %p54_p3 }
   0xf   :  { %64 = shalt.err (!%p61_p7)
}
  0x10   :  { %17 = dma.hbm_to_vmem [thread:$0]  %s128_s0, 128, %s15_s7, [#allocation3]  }
  0x11   :  { %87 = dma.done.wait [#allocation3], 128  }
  0x12   :  { %88 = vsyncadd [#allocation3], 4294967168  ;;  %v21_v0 = vld [vmem:[#allocation2] sm:$0xff]  ;;  %s92_s18 = smov 1   ;;  %s93_s19 = smov [#allocation5]  }
  0x13   :  { %22 = vrot.lane.b32.xlu0 %v21_v0, %s92_s18  ;;  %s31_s20 = sshll.u32 %s93_s19, 4  ;;  %s32_s20 = int_to_ptr.vmem [resolvable:$true] %s31_s20 }
  0x14   :  { %s65_s21 = scalar_lea.vmem %s32_s20, 128  ;;  %p70_p9 = scmp.lt.s32.totalorder %s32_s20, %s32_s20 }
  0x15   :  { %p66_p8 = scmp.ne.s32.totalorder %s32_s20, %s65_s21  ;;  %p71_p10 = scmp.lt.s32.totalorder %s65_s21, %s65_s21 }
  0x17   :  { %p72_p11 = por %p71_p10, %p70_p9 }
  0x19   :  { %p73_p12 = pnand %p72_p11, %p66_p8 }
  0x85   :  { %v23_v1 = vpop.permute.xlu0 %22 }
  0x86   :  { %24 = vst [vmem:[#allocation5] sm:$0xff] %v23_v1 }
  0x87   :  { %76 = shalt.err (!%p73_p12)
}
  0x88   :  { %s77_s0 = scalar_lea.hbm %s129_s1, 128 }
  0x89   :  { %p78_p13 = scmp.ne.s32.totalorder %s129_s1, %s77_s0  ;;  %p81_p0 = scmp.lt.u32.totalorder %s77_s0, %s129_s1 }
  0x8b   :  { %p83_p1 = pnand %p81_p0, %p78_p13 }
  0x8d   :  { %86 = shalt.err (!%p83_p1)
}
  0x8e   :  { %34 = dma.vmem_to_hbm [thread:$0]  %s32_s20, 128, %s129_s1, [#allocation4]  }
  0x8f   :  { %89 = dma.done.wait [#allocation4], 128  }
  0x90   :  { %90 = vsyncadd [#allocation4], 4294967168 }
  0x91   :  { %38 = vsyncpa [#allocation3], 1 }
  0x92   :  { %39 = vsyncpa [#allocation4], 1 }

</bundles_post_ra>
